<compile_context>
chip_gen: v6e
topology: v6e:2x2x1
jax: 0.10.0
libtpu: 0.0.40
codegen_flags: <defaults>
</compile_context>

<pallas_src>
import jax
import jax.numpy as jnp
from jax import lax
from jax.experimental import pallas as pl
from jax.experimental.pallas import tpu as pltpu


def _round_up(x, m):
    return ((x + m - 1) // m) * m


def _chip_budgets():
    """(tile_budget_bytes, vmem_limit_cap_bytes) derived from the chip's VMEM size."""
    cap = None
    try:
        info = pltpu.get_tpu_info()
        cap = int(getattr(info, "vmem_capacity_bytes", 0)) or None
    except Exception:
        cap = None
    if cap is None:
        cap = 64 * 1024 * 1024                     # conservative default (v7x-sized VMEM)
    if cap > 80 * 1024 * 1024:                     # v5e / v6e: 128 MiB physical VMEM
        return 24 * 1024 * 1024, 64 * 1024 * 1024
    return 10 * 1024 * 1024, 40 * 1024 * 1024      # v7x: 64 MiB physical VMEM


def _vmem_use(cfp, cf_tot, tm, h, tco, isz, out_isz):
    """Per-step VMEM: double-buffered blocks + both scratch buffers."""
    return (2 * cfp * (tm + h) * isz       # x main + halo blocks (double-buffered)
            + 2 * tco * cf_tot * isz       # weight block (double-buffered)
            + 2 * tco * 4                  # bias block (f32, double-buffered)
            + 2 * tco * tm * out_isz       # output block (double-buffered)
            + cfp * (tm + h) * isz         # staged-window scratch
            + cf_tot * tm * isz)           # folded-tap column scratch


def _pick_tco(c_out_pad):
    # 256 amortizes weight DMA while keeping the (TCO, TM) f32 dot result small enough
    # for v5e's single vector-store slot; 128 when C_out_pad is a single lane tile.
    for cand in (256, 128):
        if cand <= c_out_pad and c_out_pad % cand == 0:
            return cand
    return 128


def _pick_tm(l_out, cfp, cf_tot, tco, h, isz, out_isz, budget):
    tm = 128
    for cand in (1024, 512, 256, 128):
        if _vmem_use(cfp, cf_tot, cand, h, tco, isz, out_isz) <= budget:
            tm = cand
            break
    tm = min(tm, _round_up(max(l_out, 1), 128))    # don't over-pad tiny outputs
    tm = _round_up(max(tm, h), h)                  # halo block size must divide the tile
    return tm


def _make_kernel(k_f, c_f_pad, tm, h, stage_axis):
    """stage_axis: grid axis whose index==0 gates staging (None -> stage every step)."""

    def kernel(xm_ref, xh_ref, w_ref, b_ref, o_ref, win_ref, xcol_ref):
        # xm_ref : (1, C_f_pad, TM)   main activation window (L on lanes)
        # xh_ref : (1, C_f_pad, H)    halo = first H columns of the next window
        # w_ref  : (TCO, K_f*C_f_pad) flattened tap-major weights
        # b_ref  : (TCO, 1)           bias column (f32)
        # o_ref  : (1, TCO, TM)       output tile directly in NCW layout
        # win_ref: (C_f_pad, TM+H)    staged window scratch
        # xcol_ref: (K_f*C_f_pad, TM) folded-tap column scratch (dot RHS)
        def stage():
            if k_f == 1:
                xcol_ref[...] = xm_ref[0]
            else:
                # Stage main window + halo contiguously, then build K_f lane-shifted
                # copies so all taps live in the matmul contraction dimension.
                win_ref[:, 0:tm] = xm_ref[0]
                win_ref[:, tm:tm + h] = xh_ref[0]
                for d in range(k_f):
                    xcol_ref[d * c_f_pad:(d + 1) * c_f_pad, :] = win_ref[:, d:d + tm]

        if stage_axis is None:
            stage()                                    # L tile changes every step
        else:
            pl.when(pl.program_id(stage_axis) == 0)(stage)   # restage only on new (n, m)

        # One deep-contraction MXU dot per grid step; f32 accumulation + f32 bias.
        acc = jnp.dot(w_ref[...], xcol_ref[...], preferred_element_type=jnp.float32)
        o_ref[0] = (acc + b_ref[...]).astype(o_ref.dtype)

    return kernel


def conv1d_pad_same(x, weight, bias, stride, groups=1, compute_dtype=None,
                    vmem_budget_bytes=None):
    """Forward of Conv1dPadSame.  x: (N, C_in, L), weight: (C_out, C_in, K),
    bias: (C_out,).  Returns (N, C_out, L_out) with L_out = ceil(L / stride).
    compute_dtype=jnp.bfloat16 is recommended on v6e/v7x (accumulation stays f32)."""
    assert groups == 1  # TODO(synk): grouped conv (groups > 1) not implemented
    N, C_in, L = map(int, x.shape)
    C_out, _, K = map(int, weight.shape)
    s = int(stride)
    out_dtype = x.dtype
    cdt = jnp.dtype(compute_dtype) if compute_dtype is not None else jnp.dtype(x.dtype)
    isz = cdt.itemsize
    out_isz = jnp.dtype(out_dtype).itemsize

    tile_budget, vmem_cap = _chip_budgets()
    if vmem_budget_bytes is not None:
        tile_budget = int(vmem_budget_bytes)

    # --- "same" padding, exactly as in the PyTorch module ---
    L_out = (L + s - 1) // s
    p = max(0, (L_out - 1) * s + K - L)
    pad_left = p // 2

    # --- fold stride into channels so the kernel only handles stride 1 ---
    K_f = (K - 1) // s + 1                      # folded kernel taps
    Kp = K_f * s
    C_f = s * C_in                              # folded input channels
    row_align = 8 * max(1, 4 // isz)            # native sublane rows (f32: 8, bf16: 16)
    C_f_pad = _round_up(C_f, row_align)         # keeps all scratch sub-stores tile-aligned
    CF = K_f * C_f_pad                          # contraction depth of the single dot
    C_out_pad = _round_up(C_out, 128)           # lane-dense output stores

    H = _round_up(max(K_f - 1, 1), 128)         # lane-dense halo block
    TCO = _pick_tco(C_out_pad)
    TM = _pick_tm(L_out, C_f_pad, CF, TCO, H, isz, out_isz, tile_budget)

    L_out_pad = _round_up(max(L_out, 1), TM)
    M_tiles = L_out_pad // TM
    CO_tiles = C_out_pad // TCO
    tm_per_h = TM // H
    L_f = L_out_pad + H                         # folded length incl. tile padding + halo
    L_need = L_f * s                            # padded-signal length we fold from

    # --- host-side prep: fold stride, pad channels, flatten taps into the contraction ---
    x_pad = jnp.pad(x, ((0, 0), (0, 0), (pad_left, L_need - L - pad_left)))
    if s == 1:
        x_f = x_pad                                           # (N, C_f, L_f) as-is
    else:
        x_f = x_pad.reshape(N, C_in, L_f, s)                  # [n, c, j, r] = x_pad[n,c,j*s+r]
        x_f = jnp.transpose(x_f, (0, 3, 1, 2)).reshape(N, C_f, L_f)
    x_f = jnp.pad(x_f, ((0, 0), (0, C_f_pad - C_f), (0, 0))).astype(cdt)

    w_p = jnp.pad(weight, ((0, C_out_pad - C_out), (0, 0), (0, Kp - K)))
    w_p = w_p.reshape(C_out_pad, C_in, K_f, s)                # [co, c, d, r]
    w_p = jnp.transpose(w_p, (0, 2, 3, 1)).reshape(C_out_pad, K_f, C_f)  # [co, d, r*C_in+c]
    w_p = jnp.pad(w_p, ((0, 0), (0, 0), (0, C_f_pad - C_f)))
    w_flat = w_p.reshape(C_out_pad, CF).astype(cdt)           # tap-major flattened weights

    b_f = jnp.pad(bias.astype(jnp.float32), (0, C_out_pad - C_out)).reshape(C_out_pad, 1)

    # --- choose grid order by HBM traffic (x-stationary vs weight-stationary) ---
    x_bytes = N * C_f_pad * L_f * isz
    w_bytes = C_out_pad * CF * isz
    eff_w_A = w_bytes if CO_tiles == 1 else N * M_tiles * w_bytes
    eff_x_B = x_bytes if M_tiles == 1 else CO_tiles * x_bytes
    eff_w_B = w_bytes if CO_tiles == 1 else N * w_bytes
    x_stationary = (x_bytes + eff_w_A) <= (eff_x_B + eff_w_B)

    if x_stationary:
        grid = (N, M_tiles, CO_tiles)
        xm_map = lambda n, m, co: (n, 0, m)
        xh_map = lambda n, m, co: (n, 0, (m + 1) * tm_per_h)
        w_map = lambda n, m, co: (co, 0)
        o_map = lambda n, m, co: (n, co, m)
        stage_axis = 2                      # restage only when the (n, L-tile) changes
    else:
        grid = (N, CO_tiles, M_tiles)
        xm_map = lambda n, co, m: (n, 0, m)
        xh_map = lambda n, co, m: (n, 0, (m + 1) * tm_per_h)
        w_map = lambda n, co, m: (co, 0)
        o_map = lambda n, co, m: (n, co, m)
        stage_axis = None                   # L tile changes every step -> always stage
    # Innermost axis "arbitrary": required so the staging hoist cannot be megacore-split;
    # outer axes stay "parallel" for megacore sharding.
    dims = ("parallel", "parallel", "arbitrary")

    in_specs = [
        pl.BlockSpec((1, C_f_pad, TM), xm_map),   # main activation window
        pl.BlockSpec((1, C_f_pad, H), xh_map),    # halo (first H cols of the next window)
        pl.BlockSpec((TCO, CF), w_map),           # flattened tap-major weights
        pl.BlockSpec((TCO, 1), w_map),            # bias column (f32)
    ]
    out_spec = pl.BlockSpec((1, TCO, TM), o_map)

    flops = 2 * N * L_out_pad * CF * C_out_pad
    halo_blk = C_f_pad * H * isz
    if x_stationary:
        x_traffic = x_bytes + N * M_tiles * halo_blk
        w_traffic = eff_w_A
    else:
        x_traffic = eff_x_B + N * CO_tiles * M_tiles * halo_blk
        w_traffic = eff_w_B
    bytes_accessed = int(x_traffic + w_traffic + C_out_pad * 4
                         + N * C_out_pad * L_out_pad * out_isz)

    per_step = _vmem_use(C_f_pad, CF, TM, H, TCO, isz, out_isz)
    vmem_limit = int(min(vmem_cap, max(32 * 1024 * 1024, 2 * per_step)))
    vmem_limit = max(vmem_limit, per_step + 2 * 1024 * 1024)

    kernel = _make_kernel(K_f, C_f_pad, TM, H, stage_axis)

    out_f = pl.pallas_call(
        kernel,
        out_shape=jax.ShapeDtypeStruct((N, C_out_pad, L_out_pad), out_dtype),
        grid=grid,
        in_specs=in_specs,
        out_specs=out_spec,
        scratch_shapes=[pltpu.VMEM((C_f_pad, TM + H), cdt),   # staged window
                        pltpu.VMEM((CF, TM), cdt)],           # folded tap columns
        compiler_params=pltpu.CompilerParams(
            dimension_semantics=dims, vmem_limit_bytes=vmem_limit),
        cost_estimate=pl.CostEstimate(flops=int(flops), transcendentals=0,
                                      bytes_accessed=bytes_accessed),
    )(x_f, x_f, w_flat, b_f)

    # Output is already NCW; just drop channel / length padding.
    return out_f[:, :C_out, :L_out]


if __name__ == "__main__":
    key = jax.random.PRNGKey(0)

    def ref_conv1d_pad_same(x, w, b, stride):
        L = x.shape[-1]
        K = w.shape[-1]
        out_dim = (L + stride - 1) // stride
        p = max(0, (out_dim - 1) * stride + K - L)
        y = lax.conv_general_dilated(
            x, w, window_strides=(stride,),
            padding=[(p // 2, p - p // 2)],
            dimension_numbers=("NCH", "OIH", "NCH"),
            precision=lax.Precision.HIGHEST)
        return y + b[None, :, None]

    configs = [
        # (N, C_in, C_out, K, stride, L, compute_dtype, atol)
        (2, 4, 8, 3, 2, 16, None, 2e-4),        # strided conv (space-to-depth fold)
        (2, 4, 8, 5, 1, 16, None, 2e-4),        # stride-1 conv
        (2, 4, 8, 3, 4, 32, None, 2e-4),        # stride > kernel (single folded tap)
        (2, 4, 384, 16, 2, 64, None, 2e-4),     # several C_out tiles -> staging hoist
        (1, 8, 512, 16, 1, 4096, None, 3e-4),   # weight-stationary grid order
        (2, 4, 8, 5, 1, 16, jnp.bfloat16, 3e-2),  # bf16 fast path, f32 accumulation
    ]
    for (N, C_in, C_out, K, stride, L, cdt, tol) in configs:
        k1, k2, k3, key = jax.random.split(key, 4)
        x = jax.random.normal(k1, (N, C_in, L), dtype=jnp.float32)
        w = jax.random.normal(k2, (C_out, C_in, K), dtype=jnp.float32) * 0.1
        b = jax.random.normal(k3, (C_out,), dtype=jnp.float32) * 0.1

        out = jax.block_until_ready(conv1d_pad_same(x, w, b, stride, compute_dtype=cdt))
        ref = ref_conv1d_pad_same(x, w, b, stride)
        assert out.shape == ref.shape == (N, C_out, (L + stride - 1) // stride), \
            (out.shape, ref.shape)
        err = float(jnp.max(jnp.abs(out - ref)))
        assert err <= tol, (N, C_in, C_out, K, stride, L, cdt, err)

    print("KERNEL_OK")
</pallas_src>

<mosaic_0001>
module attributes {stable_mosaic.version = 11 : i64} {
  func.func @kernel(%arg0: i32, %arg1: i32, %arg2: i32, %arg3: memref<1x8x128xf32, #tpu.memory_space<vmem>>, %arg4: memref<1x8x128xf32, #tpu.memory_space<vmem>>, %arg5: memref<128x16xf32, #tpu.memory_space<vmem>>, %arg6: memref<128x1xf32, #tpu.memory_space<vmem>>, %arg7: memref<1x128x128xf32, #tpu.memory_space<vmem>>, %arg8: memref<8x256xf32, #tpu.memory_space<vmem>>, %arg9: memref<16x128xf32, #tpu.memory_space<vmem>>) attributes {dimension_semantics = [#tpu.dimension_semantics<parallel>, #tpu.dimension_semantics<parallel>, #tpu.dimension_semantics<arbitrary>], iteration_bounds = array<i64: 2, 1, 1>, scalar_prefetch = 0 : i64, scratch_operands = 2 : i64, tpu.core_type = #tpu.core_type<tc>, window_params = [{transform_indices = @transform_0, window_bounds = array<i64: 1, 8, 128>}, {transform_indices = @transform_1, window_bounds = array<i64: 1, 8, 128>}, {transform_indices = @transform_2, window_bounds = array<i64: 128, 16>}, {transform_indices = @transform_3, window_bounds = array<i64: 128, 1>}, {transform_indices = @transform_4, window_bounds = array<i64: 1, 128, 128>}]} {
    %c0_i32 = arith.constant 0 : i32
    %0 = arith.cmpi eq, %arg2, %c0_i32 : i32
    %1 = arith.extui %0 : i1 to i32
    %c0_i32_0 = arith.constant 0 : i32
    %2 = arith.cmpi ne, %1, %c0_i32_0 : i32
    scf.if %2 {
      %c0_9 = arith.constant 0 : index
      %c0_10 = arith.constant 0 : index
      %c0_11 = arith.constant 0 : index
      %12 = vector.load %arg3[%c0_9, %c0_10, %c0_11] : memref<1x8x128xf32, #tpu.memory_space<vmem>>, vector<1x8x128xf32>
      %13 = vector.shape_cast %12 : vector<1x8x128xf32> to vector<8x128xf32>
      %c0_12 = arith.constant 0 : index
      %c0_13 = arith.constant 0 : index
      %14 = vector.load %arg8[%c0_12, %c0_13] : memref<8x256xf32, #tpu.memory_space<vmem>>, vector<8x128xf32>
      tpu.vector_store %arg8[%c0_12, %c0_13], %13 {strides = array<i32>} : memref<8x256xf32, #tpu.memory_space<vmem>>, vector<8x128xf32>,
      %c0_14 = arith.constant 0 : index
      %c0_15 = arith.constant 0 : index
      %c0_16 = arith.constant 0 : index
      %15 = vector.load %arg4[%c0_14, %c0_15, %c0_16] : memref<1x8x128xf32, #tpu.memory_space<vmem>>, vector<1x8x128xf32>
      %16 = vector.shape_cast %15 : vector<1x8x128xf32> to vector<8x128xf32>
      %c0_17 = arith.constant 0 : index
      %c128 = arith.constant 128 : index
      %17 = vector.load %arg8[%c0_17, %c128] : memref<8x256xf32, #tpu.memory_space<vmem>>, vector<8x128xf32>
      tpu.vector_store %arg8[%c0_17, %c128], %16 {strides = array<i32>} : memref<8x256xf32, #tpu.memory_space<vmem>>, vector<8x128xf32>,
      %c0_18 = arith.constant 0 : index
      %c0_19 = arith.constant 0 : index
      %18 = vector.load %arg8[%c0_18, %c0_19] : memref<8x256xf32, #tpu.memory_space<vmem>>, vector<8x128xf32>
      %c0_20 = arith.constant 0 : index
      %c0_21 = arith.constant 0 : index
      %19 = vector.load %arg9[%c0_20, %c0_21] : memref<16x128xf32, #tpu.memory_space<vmem>>, vector<8x128xf32>
      tpu.vector_store %arg9[%c0_20, %c0_21], %18 {strides = array<i32>} : memref<16x128xf32, #tpu.memory_space<vmem>>, vector<8x128xf32>,
      %c0_22 = arith.constant 0 : index
      %c1 = arith.constant 1 : index
      %20 = vector.load %arg8[%c0_22, %c1] : memref<8x256xf32, #tpu.memory_space<vmem>>, vector<8x128xf32>
      %c8 = arith.constant 8 : index
      %c0_23 = arith.constant 0 : index
      %21 = vector.load %arg9[%c8, %c0_23] : memref<16x128xf32, #tpu.memory_space<vmem>>, vector<8x128xf32>
      tpu.vector_store %arg9[%c8, %c0_23], %20 {strides = array<i32>} : memref<16x128xf32, #tpu.memory_space<vmem>>, vector<8x128xf32>,
    } else {
    }
    %c0 = arith.constant 0 : index
    %c0_1 = arith.constant 0 : index
    %3 = vector.load %arg5[%c0, %c0_1] : memref<128x16xf32, #tpu.memory_space<vmem>>, vector<128x16xf32>
    %c0_2 = arith.constant 0 : index
    %c0_3 = arith.constant 0 : index
    %4 = vector.load %arg9[%c0_2, %c0_3] : memref<16x128xf32, #tpu.memory_space<vmem>>, vector<16x128xf32>
    %cst = arith.constant dense<0.000000e+00> : vector<128x128xf32>
    %5 = tpu.matmul %3, %4, %cst {dimension_numbers = #tpu.dot_dimension_numbers<[1], [0], [0], [1], [0, 0, 1, 1], [], []>} : vector<128x16xf32>, vector<16x128xf32>, vector<128x128xf32> -> vector<128x128xf32>
    %c0_4 = arith.constant 0 : index
    %c0_5 = arith.constant 0 : index
    %6 = vector.load %arg6[%c0_4, %c0_5] : memref<128x1xf32, #tpu.memory_space<vmem>>, vector<128x1xf32>
    %7 = vector.broadcast %6 : vector<128x1xf32> to vector<128x128xf32>
    %8 = arith.addf %5, %7 : vector<128x128xf32>
    %c0_6 = arith.constant 0 : index
    %c0_7 = arith.constant 0 : index
    %c0_8 = arith.constant 0 : index
    %9 = vector.load %arg7[%c0_6, %c0_7, %c0_8] : memref<1x128x128xf32, #tpu.memory_space<vmem>>, vector<1x128x128xf32>
    %10 = vector.shape_cast %9 : vector<1x128x128xf32> to vector<128x128xf32>
    %11 = vector.shape_cast %8 : vector<128x128xf32> to vector<1x128x128xf32>
    tpu.vector_store %arg7[%c0_6, %c0_7, %c0_8], %11 {strides = array<i32>} : memref<1x128x128xf32, #tpu.memory_space<vmem>>, vector<1x128x128xf32>,
    return
  }
  func.func @transform_0(%arg0: i32, %arg1: i32, %arg2: i32) -> (i32, i32, i32) {
    %c0_i32 = arith.constant 0 : i32
    %c0_i32_0 = arith.constant 0 : i32
    return %arg0, %c0_i32, %arg1 : i32, i32, i32
  }
  func.func @transform_1(%arg0: i32, %arg1: i32, %arg2: i32) -> (i32, i32, i32) {
    %c1_i32 = arith.constant 1 : i32
    %0 = arith.addi %arg1, %c1_i32 : i32
    %c1_i32_0 = arith.constant 1 : i32
    %1 = arith.muli %0, %c1_i32_0 : i32
    %c0_i32 = arith.constant 0 : i32
    %c0_i32_1 = arith.constant 0 : i32
    return %arg0, %c0_i32, %1 : i32, i32, i32
  }
  func.func @transform_2(%arg0: i32, %arg1: i32, %arg2: i32) -> (i32, i32) {
    %c0_i32 = arith.constant 0 : i32
    %c0_i32_0 = arith.constant 0 : i32
    return %arg2, %c0_i32 : i32, i32
  }
  func.func @transform_3(%arg0: i32, %arg1: i32, %arg2: i32) -> (i32, i32) {
    %c0_i32 = arith.constant 0 : i32
    %c0_i32_0 = arith.constant 0 : i32
    return %arg2, %c0_i32 : i32, i32
  }
  func.func @transform_4(%arg0: i32, %arg1: i32, %arg2: i32) -> (i32, i32, i32) {
    %c0_i32 = arith.constant 0 : i32
    return %arg0, %arg2, %arg1 : i32, i32, i32
  }
}

</mosaic_0001>

<bundles_post_ra>
// kernel: tpu_custom_call.1
= control target key start
LH: loop header
LB: loop body
LE: loop exit
PB: predicated region body
PF: predicated region fallthrough
CT: control target
= control target key end

     0   :  { %9 = vsyncpa [#allocation5], 0  ;;  %s1316_s0 = inlined_call_operand.vmem [shape: f32[2,8,256], index: 0, kind: input, shape index: {}]   ;;  %s1317_s1 = inlined_call_operand.vmem [shape: f32[2,8,256], index: 1, kind: input, shape index: {}]   ;;  %s1318_s2 = inlined_call_operand.vmem [shape: f32[128,16], index: 2, kind: input, shape index: {}]   ;;  %s1319_s3 = inlined_call_operand.vmem [shape: f32[128,1], index: 3, kind: input, shape index: {}]   ;;  %s1320_s4 = inlined_call_operand.hbm [shape: f32[2,128,128], index: 4, kind: output, shape index: {}]  }
   0x1   :  { %11 = vsyncpa [#allocation5 + $0x1], 0  ;;  %s1064_s15 = smov 0   ;;  %s1066_s16 = smov 0  }
   0x2   :  { %s1068_s17 = smov 0   ;;  %s1070_s18 = smov 0  }
   0x3   :  { %s1072_s19 = smov 0   ;;  %s1074_s20 = smov 0  }
   0x4 LB: > { %s807_s21 = sadd.s32 4294967295, %s1032_s20   ;;  %s808_s22 = sadd.s32 4294967294, %s1032_s20   ;;  %s1032_s20 = sphi %s1074_s20, %s17_s20   ;;  %s1028_s19 = sphi %s1072_s19, %s1327_s19   ;;  %s1024_s18 = sphi %s1070_s18, %s1326_s18   ;;  %s1020_s17 = sphi %s1068_s17, %s1325_s17   ;;  %s1016_s16 = sphi %s1066_s16, %s1324_s16   ;;  %s1012_s15 = sphi %s1064_s15, %s1323_s15  }
   0x5   : > { %s36_s23 = sadd.s32 1, %s1028_s19  ;;  %s157_s24 = sadd.s32 1, %s1020_s17 }
   0x6   : > { %p38_p0 = scmp.ge.s32.totalorder %s36_s23, 2  ;;  %p167_p1 = scmp.ne.s32.totalorder %s1020_s17, %s1016_s16 }
   0x7   : > { %p168_p2 = scmp.eq.s32.totalorder %s807_s21, 1  ;;  %p173_p3 = scmp.ne.s32.totalorder %s1016_s16, %s1012_s15 }
   0x8   : > { %s1329_s23 = smov (%p38_p0, %s36_s23), 0  ;;  %p174_p5 = scmp.eq.s32.totalorder %s808_s22, 1 }
   0x9   : > { %p1104_p4 = por %p168_p2, %p167_p1  ;;  %s150_s26 = ssub.s32 %s1028_s19, %s1329_s23 }
   0xa   : > { %p813_p6 = scmp.ge.s32.totalorder %s1032_s20, 1  ;;  %p155_p7 = scmp.eq.s32.totalorder %s150_s26, 0 }
   0xb   : > { %p1111_p8 = por %p174_p5, %p173_p3  ;;  %p234_p9 = scmp.lt.s32.totalorder %s1032_s20, 3 }
   0xc   : > { %s1117_s28 = scalar_select %p155_p7, %s1020_s17, %s157_s24  }
   0xd   : > { %p235_p10 = pnand %p813_p6, %p234_p9 }
   0xe   : > { %p282_p11 = scmp.lt.s32.totalorder (!%p235_p10), %s1024_s18, 1  ;;  %s1034_s22 = smov (!%p235_p10), 127  }
   0xf   : > { %238 = sbr.rel (%p235_p10) target bundleno = 372 (0x174), region = 36  ;;  %s279_s13 = sand.u32 (!%p235_p10), 1, %s1016_s16  }
  0x10   : > { %s814_s14 = sshll.u32 (!%p235_p10), %s279_s13, 7  ;;  %s1036_s6 = smov (!%p235_p10), [#allocation4]  }
  0x14   : > { %v335_v0 = vld [vmem:[%s1318_s2] sm:$0xff]  ;;  %vm449_vm0 = vcmask 130048   ;;  %s283_s7 = scalar_select %p282_p11, %s1024_s18, 1  ;;  %v1035_v5 = vmov 0   ;;  %v355_v6 = vld [vmem:[%s1319_s3 + $0x10] sm:$0xff]  ;;  %v354_v7 = vld [vmem:[%s1319_s3 + $0x8] sm:$0xff] }
  0x15   : > { %v343_v1 = vld [vmem:[%s1318_s2 + $0x40] sm:$0xff]  ;;  %867 = vmatprep.mubr.msk.f32.mxu0 %vm449_vm0, %v335_v0  ;;  %954 = vset.pattern.permute.xlu1 %v1035_v5  ;;  %v358_v8 = vld [vmem:[%s1319_s3 + $0x28] sm:$0xff]  ;;  %v356_v9 = vld [vmem:[%s1319_s3 + $0x18] sm:$0xff]  ;;  %vm331_vm1 = vcmask 1039360  }
  0x16   : > { %879 = vmatprep.mubr.msk.f32.mxu1 %vm449_vm0, %v343_v1  ;;  %s840_s8 = sshll.u32 %s283_s7, 4  ;;  %v353_v4 = vld [vmem:[%s1319_s3] sm:$0xff]  ;;  %955 = vset.pattern.permute.xlu0 %v1035_v5  ;;  %v360_v10 = vld [vmem:[%s1319_s3 + $0x38] sm:$0xff]  ;;  %v362_v12 = vld [vmem:[%s1319_s3 + $0x48] sm:$0xff]  ;;  %s960_s7 = sshll.u32 %s1036_s6, 4  ;;  %s961_s7 = int_to_ptr.vmem [resolvable:$false] %s960_s7 }
  0x17   : > { %s289_s11 = scalar_lea.vmem %s1316_s0, %s840_s8  ;;  %s842_s12 = sadd.s32 8, %s840_s8  ;;  %371 = vperm.xlu1 %954, %v353_v4   ;;  %v357_v11 = vld [vmem:[%s1319_s3 + $0x20] sm:$0xff]  ;;  %v359_v13 = vld [vmem:[%s1319_s3 + $0x30] sm:$0xff]  ;;  %v364_v14 = vld [vmem:[%s1319_s3 + $0x58] sm:$0xff] }
  0x18   : > { %v317_v2 = vld [vmem:[%s289_s11] sm:$0xff]  ;;  %s298_s21 = scalar_lea.vmem %s1317_s1, %s842_s12  ;;  %v366_v16 = vld [vmem:[%s1319_s3 + $0x68] sm:$0xff]  ;;  %v363_v17 = vld [vmem:[%s1319_s3 + $0x50] sm:$0xff]  ;;  %s962_s8 = scalar_lea.vmem %s961_s7, 4096 }
  0x19   : > { %327 = vrot.lane.b32.xlu0 %v317_v2, %s1034_s22  ;;  %v319_v3 = vld [vmem:[%s298_s21] sm:$0xff]  ;;  %v368_v18 = vld [vmem:[%s1319_s3 + $0x78] sm:$0xff]  ;;  %v367_v20 = vld [vmem:[%s1319_s3 + $0x70] sm:$0xff]  ;;  %s1242_s21 = scalar_lea.vmem [#allocation4], %s814_s14 }
  0x1a   : > { %v361_v15 = vld [vmem:[%s1319_s3 + $0x40] sm:$0xff]  ;;  %v336_v24 = vld [vmem:[%s1318_s2 + $0x8] sm:$0xff]  ;;  %v337_v26 = vld [vmem:[%s1318_s2 + $0x10] sm:$0xff]  ;;  %s676_s24 = sshll.u32 %s1242_s21, 4  ;;  %s1263_s24 = int_to_ptr.vmem [resolvable:$true] %s676_s24 }
  0x1b   : > { %376 = vperm.xlu1 %954, %v354_v7   ;;  %v365_v19 = vld [vmem:[%s1319_s3 + $0x60] sm:$0xff]  ;;  %v344_v25 = vld [vmem:[%s1318_s2 + $0x48] sm:$0xff]  ;;  %v345_v27 = vld [vmem:[%s1318_s2 + $0x50] sm:$0xff]  ;;  %s956_s5 = scalar_lea.vmem %s1263_s24, 2048  ;;  %p963_p1 = scmp.lt.s32.totalorder %s1263_s24, %s961_s7 }
  0x1c   : > { %v338_v28 = vld [vmem:[%s1318_s2 + $0x18] sm:$0xff]  ;;  %v339_v30 = vld [vmem:[%s1318_s2 + $0x20] sm:$0xff]  ;;  %v340_v32 = vld [vmem:[%s1318_s2 + $0x28] sm:$0xff]  ;;  %p957_p12 = scmp.ne.s32.totalorder %s1263_s24, %s956_s5  ;;  %p964_p2 = scmp.lt.s32.totalorder %s962_s8, %s956_s5 }
  0x1d   : > { %329 = vrot.lane.b32.xlu0 %v319_v3, %s1034_s22  ;;  %v346_v29 = vld [vmem:[%s1318_s2 + $0x58] sm:$0xff]  ;;  %v347_v31 = vld [vmem:[%s1318_s2 + $0x60] sm:$0xff]  ;;  %v348_v33 = vld [vmem:[%s1318_s2 + $0x68] sm:$0xff]  ;;  %s843_s22 = sshll.u32 %s1024_s18, 11  ;;  %s1271_s18 = scalar_lea.sflag [#allocation5], %s279_s13 }
  0x1e   : > { %v341_v34 = vld [vmem:[%s1318_s2 + $0x30] sm:$0xff]  ;;  %v342_v36 = vld [vmem:[%s1318_s2 + $0x38] sm:$0xff]  ;;  %s1261_s30 = scalar_lea.hbm %s1320_s4, %s843_s22  ;;  %p958_p13 = pnand %p957_p12, %p1104_p4 }
  0x1f   : > { %386 = vperm.xlu1 %954, %v356_v9   ;;  %v349_v35 = vld [vmem:[%s1318_s2 + $0x70] sm:$0xff]  ;;  %v350_v37 = vld [vmem:[%s1318_s2 + $0x78] sm:$0xff]  ;;  %p965_p3 = por %p964_p2, %p963_p1 }
  0x20   : > { %p959_p0 = pneg %p958_p13 }
  0x21   : > { %381 = vperm.xlu0 %955, %v355_v6  }
  0x22   : > { %p966_p5 = pnand %p965_p3, %p959_p0 }
  0x23   : > { %391 = vperm.xlu1 %954, %v357_v11  }
  0x25   : > { %396 = vperm.xlu0 %955, %v358_v8  }
  0x27   : > { %401 = vperm.xlu1 %954, %v359_v13  }
  0x29   : > { %406 = vperm.xlu0 %955, %v360_v10  }
  0x2b   : > { %411 = vperm.xlu1 %954, %v361_v15  }
  0x2d   : > { %416 = vperm.xlu0 %955, %v362_v12  }
  0x2f   : > { %421 = vperm.xlu1 %954, %v363_v17  }
  0x31   : > { %426 = vperm.xlu0 %955, %v364_v14  }
  0x33   : > { %431 = vperm.xlu1 %954, %v365_v19  }
  0x35   : > { %436 = vperm.xlu0 %955, %v366_v16  }
  0x37   : > { %441 = vperm.xlu1 %954, %v367_v20  }
  0x39   : > { %446 = vperm.xlu0 %955, %v368_v18  }
  0x8b   : > { %v328_v21 = vpop.permute.xlu0 %327 }
  0x8f   : > { %v330_v22 = vpop.permute.xlu0 %329 }
  0x90   : > { %v332_v23 = vsel %vm331_vm1, %v328_v21, %v330_v22 }
  0x91   : > { %863 = vmatprep.subr.mxu0 %v332_v23  ;;  %891 = vmatprep.subr.mxu1 %v332_v23 }
  0x92   : > { %864 = vmatpush3.msra.mxu0 %v332_v23  ;;  %893 = vmatpush3.msra.mxu1 %v332_v23  ;;  %v372_v38 = vpop.permute.xlu1 %371 }
  0x93   : > { %865 = vmatprep.subr.mxu0 %v317_v2  ;;  %892 = vmatprep.subr.mxu1 %v317_v2 }
  0x94   : > { %866 = vmatpush3.msra.mxu0 %v317_v2  ;;  %894 = vmatpush3.msra.mxu1 %v317_v2 }
  0x95   : > { %868 = vmatmul.mubr.msk.f32.vlgmr.msra.gmra.mxu0 %vm449_vm0, %v336_v24  ;;  %880 = vmatmul.mubr.msk.f32.vlgmr.msra.gmra.mxu1 %vm449_vm0, %v344_v25 }
  0x96   : > { %870 = vmatprep.mubr.msk.f32.mxu0 %vm449_vm0, %v337_v26  ;;  %882 = vmatprep.mubr.msk.f32.mxu1 %vm449_vm0, %v345_v27  ;;  %v377_v39 = vpop.permute.xlu1 %376 }
  0x99   : > { %871 = vmatmul.mubr.msk.f32.gmra.mxu0 %vm449_vm0, %v338_v28  ;;  %883 = vmatmul.mubr.msk.f32.gmra.mxu1 %vm449_vm0, %v346_v29 }
  0x9a   : > { %873 = vmatprep.mubr.msk.f32.mxu0 %vm449_vm0, %v339_v30  ;;  %885 = vmatprep.mubr.msk.f32.mxu1 %vm449_vm0, %v347_v31  ;;  %v387_v41 = vpop.permute.xlu1 %386 }
  0x9c   : > { %v382_v40 = vpop.permute.xlu0 %381 }
  0x9d   : > { %874 = vmatmul.mubr.msk.f32.gmra.mxu0 %vm449_vm0, %v340_v32  ;;  %886 = vmatmul.mubr.msk.f32.gmra.mxu1 %vm449_vm0, %v348_v33 }
  0x9e   : > { %876 = vmatprep.mubr.msk.f32.mxu0 %vm449_vm0, %v341_v34  ;;  %888 = vmatprep.mubr.msk.f32.mxu1 %vm449_vm0, %v349_v35  ;;  %v392_v43 = vpop.permute.xlu1 %391 }
  0xa0   : > { %v397_v42 = vpop.permute.xlu0 %396 }
  0xa1   : > { %877 = vmatmul.mubr.msk.f32.gmra.mxu0 %vm449_vm0, %v342_v36  ;;  %889 = vmatmul.mubr.msk.f32.gmra.mxu1 %vm449_vm0, %v350_v37 }
  0xa2   : > { %v402_v45 = vpop.permute.xlu1 %401 }
  0xa4   : > { %v407_v44 = vpop.permute.xlu0 %406 }
  0xa6   : > { %v412_v47 = vpop.permute.xlu1 %411 }
  0xa8   : > { %v417_v46 = vpop.permute.xlu0 %416 }
  0xaa   : > { %v422_v51 = vpop.permute.xlu1 %421 }
  0xac   : > { %v427_v48 = vpop.permute.xlu0 %426 }
  0xae   : > { %v432_v1 = vpop.permute.xlu1 %431 }
  0xb0   : > { %v437_v60 = vpop.permute.xlu0 %436 }
  0xb2   : > { %v442_v15 = vpop.permute.xlu1 %441 }
  0xb4   : > { %v447_v10 = vpop.permute.xlu0 %446 }
 0x155   : > { %v869_v49 = vpop.f32.mrf.mxu0  ;;  %v881_v50 = vpop.f32.mrf.mxu1 }
 0x156   : > { %v570_v52 = vadd.f32 %v869_v49, %v377_v39  ;;  %v610_v53 = vadd.f32 %v881_v50, %v417_v46 }
 0x157   : > { %v564_v54 = vpop.f32.mrf.mxu0  ;;  %v604_v55 = vpop.f32.mrf.mxu1 }
 0x158   : > { %644 = vst [vmem:[%s1242_s21 + $0x8] sm:$0xff] %v570_v52  ;;  %652 = vst [vmem:[%s1242_s21 + $0x48] sm:$0xff] %v610_v53  ;;  %v565_v56 = vadd.f32 %v564_v54, %v372_v38  ;;  %v605_v57 = vadd.f32 %v604_v55, %v412_v47 }
 0x159   : > { %v872_v58 = vpop.f32.mrf.mxu0  ;;  %v884_v59 = vpop.f32.mrf.mxu1 }
 0x15a   : > { %643 = vst [vmem:[%s1242_s21] sm:$0xff] %v565_v56  ;;  %651 = vst [vmem:[%s1242_s21 + $0x40] sm:$0xff] %v605_v57  ;;  %v580_v61 = vadd.f32 %v872_v58, %v387_v41  ;;  %v620_v62 = vadd.f32 %v884_v59, %v427_v48 }
 0x15b   : > { %v574_v63 = vpop.f32.mrf.mxu0  ;;  %v614_v0 = vpop.f32.mrf.mxu1 }
 0x15c   : > { %646 = vst [vmem:[%s1242_s21 + $0x18] sm:$0xff] %v580_v61  ;;  %654 = vst [vmem:[%s1242_s21 + $0x58] sm:$0xff] %v620_v62  ;;  %v575_v2 = vadd.f32 %v574_v63, %v382_v40  ;;  %v615_v3 = vadd.f32 %v614_v0, %v422_v51 }
 0x15d   : > { %v875_v4 = vpop.f32.mrf.mxu0  ;;  %v887_v5 = vpop.f32.mrf.mxu1 }
 0x15e   : > { %645 = vst [vmem:[%s1242_s21 + $0x10] sm:$0xff] %v575_v2  ;;  %653 = vst [vmem:[%s1242_s21 + $0x50] sm:$0xff] %v615_v3  ;;  %v590_v6 = vadd.f32 %v875_v4, %v397_v42  ;;  %v630_v7 = vadd.f32 %v887_v5, %v437_v60 }
 0x15f   : > { %v584_v8 = vpop.f32.mrf.mxu0  ;;  %v624_v9 = vpop.f32.mrf.mxu1 }
 0x160   : > { %648 = vst [vmem:[%s1242_s21 + $0x28] sm:$0xff] %v590_v6  ;;  %656 = vst [vmem:[%s1242_s21 + $0x68] sm:$0xff] %v630_v7  ;;  %v585_v11 = vadd.f32 %v584_v8, %v392_v43  ;;  %v625_v12 = vadd.f32 %v624_v9, %v432_v1 }
 0x161   : > { %v878_v13 = vpop.f32.mrf.mxu0  ;;  %v890_v14 = vpop.f32.mrf.mxu1 }
 0x162   : > { %647 = vst [vmem:[%s1242_s21 + $0x20] sm:$0xff] %v585_v11  ;;  %655 = vst [vmem:[%s1242_s21 + $0x60] sm:$0xff] %v625_v12  ;;  %v600_v16 = vadd.f32 %v878_v13, %v407_v44  ;;  %v640_v17 = vadd.f32 %v890_v14, %v447_v10 }
 0x163   : > { %v594_v18 = vpop.f32.mrf.mxu0  ;;  %v634_v19 = vpop.f32.mrf.mxu1 }
 0x164   : > { %650 = vst [vmem:[%s1242_s21 + $0x38] sm:$0xff] %v600_v16  ;;  %658 = vst [vmem:[%s1242_s21 + $0x78] sm:$0xff] %v640_v17  ;;  %v595_v20 = vadd.f32 %v594_v18, %v402_v45  ;;  %v635_v21 = vadd.f32 %v634_v19, %v442_v15 }
 0x166   : > { %649 = vst [vmem:[%s1242_s21 + $0x30] sm:$0xff] %v595_v20  ;;  %657 = vst [vmem:[%s1242_s21 + $0x70] sm:$0xff] %v635_v21 }
 0x167   : > { %969 = shalt.err (!%p966_p5)
}
 0x168   : > { %s970_s9 = scalar_lea.hbm %s1261_s30, 2048  ;;  %s974_s12 = scalar_lea.hbm %s1320_s4, 4096 }
 0x169   : > { %p971_p6 = scmp.ne.s32.totalorder %s1261_s30, %s970_s9  ;;  %p975_p10 = scmp.lt.s32.totalorder %s1261_s30, %s1320_s4 }
 0x16a   : > { %p976_p11 = scmp.lt.s32.totalorder %s974_s12, %s970_s9 }
 0x16b   : > { %p972_p7 = pnand %p971_p6, %p1104_p4 }
 0x16c   : > { %p977_p12 = por %p976_p11, %p975_p10 }
 0x16d   : > { %p973_p9 = pneg %p972_p7 }
 0x16f   : > { %p978_p13 = pnand %p977_p12, %p973_p9 }
 0x171   : > { %981 = shalt.err (!%p978_p13)
}
 0x172   : > { %s1037_s21 = smov 128   ;;  %s1038_s22 = smov 8  }
 0x173   : > { %895 = dma.vmem_to_hbm [thread:$0]  (%p1104_p4), %s1263_s24, 2048, %s1261_s30, %s1271_s18, %s1037_s21, %s1037_s21, %s1038_s22  }
 0x174 PF: > { %p901_p0 = scmp.ge.s32.totalorder %s1032_s20, 2  ;;  %s691_s26 = sand.u32 1, %s1012_s15  }
 0x175   : > { %s692_s29 = scalar_lea.sflag [#allocation5], %s691_s26 }
 0x176   : > { %p898_p1 = pnand %p901_p0, %p1111_p8 }
 0x178   : > { %p899_p2 = pneg %p898_p1 }
 0x17a   : > { %1007 = dma.done.wait (%p899_p2), %s692_s29, 2048  }
 0x17b   : > { %1009 = vsyncadd (%p899_p2), %s692_s29, 4294965248  ;;  %s17_s20 = sadd.s32 1, %s1032_s20   ;;  %s1323_s15 = smov %s1016_s16 }
 0x17c   : > { %p14_p3 = scmp.ge.s32.totalorder %s17_s20, 4   ;;  %s1324_s16 = smov %s1020_s17 }
 0x17d   : > { %s1325_s17 = smov %s1117_s28  ;;  %s1326_s18 = smov %s1028_s19 }
 0x17e   : > { %s1327_s19 = smov %s1329_s23  ;;  %16 = sbr.rel (!%p14_p3) target bundleno = 4 (0x4), region = 84 }
 0x183   :  { %697 = vsyncpa [#allocation5], 1 }
 0x184   :  { %699 = vsyncpa [#allocation5 + $0x1], 1 }

</bundles_post_ra>
